<compile_context>
chip_gen: v5e
topology: v5e:2x2
jax: 0.10.0
libtpu: 0.0.40
codegen_flags: <defaults>
</compile_context>

<pallas_src>
import math

import jax
import jax.numpy as jnp
import numpy as np
from jax.experimental import pallas as pl
from jax.experimental.pallas import tpu as pltpu

EPS = 1e-07
ONEHOT_MIN = 1e-4
NEG_LOG_ONEHOT_MIN = float(-math.log(ONEHOT_MIN))   # -log(1e-4), folded at trace time


def _pow(x, g):
    """x ** g without hitting the EUP twice for the common cases."""
    if g == 0.5:
        return jnp.sqrt(x)
    if float(g).is_integer() and g >= 0:
        gi = int(g)
        if gi == 0:
            return jnp.ones_like(x)
        acc = x
        for _ in range(gi - 1):
            acc = acc * x
        return acc
    return x ** g  # TODO(synk): general non-integer gamma lowers to exp(g*log(x)) on the EUP.


def _fold_to_vreg(v, s):
    """(S,128) -> (8,128) by summing sublane-tile-aligned (8,128) chunks (free views)."""
    acc = v[0:8, :]
    for a in range(1, s // 8):
        acc = acc + v[8 * a:8 * (a + 1), :]
    return acc


def make_nfl_rce_kernel(d, tile_n, gamma, n_valid, n_padded):
    """Fused NFL + RCE partial-loss kernel for one tile of tile_n samples."""
    s = tile_n // 128                      # sublane extent of one sample tile
    needs_mask = (n_valid != n_padded)

    def kernel(pred_ref, labels_ref, nfl_ref, rce_ref):
        pred = pred_ref[...].astype(jnp.float32)      # (d, S, 128) logits
        labels = labels_ref[...]                      # (S, 128) int32

        # ---- log_softmax over classes (leading axis => dense vreg adds) ----
        m = jnp.max(pred, axis=0)                     # (S,128)
        z = pred - m[None]                            # broadcast over leading dim: free
        exp_z = jnp.exp(z)                            # single full-tensor exp pass (EUP)
        sum_exp = jnp.sum(exp_z, axis=0)              # (S,128)
        inv_sum = pl.reciprocal(sum_exp)              # exact
        log_sum = jnp.log(sum_exp)
        logpt = z - log_sum[None]                     # log-softmax, (d,S,128)
        pt_all = exp_z * inv_sum[None]                # softmax (no second exp pass)

        # ---- NormalizedFocalLoss (alpha / mean applied in wrapper) ----
        # max(., 0) only guards pow(tiny-negative, 0.5) NaNs from fp rounding.
        w = _pow(jnp.maximum(1.0 - pt_all, 0.0), gamma)
        neg_norm = jnp.sum(w * logpt, axis=0)         # = -normalizor  (<= 0)
        cls = jax.lax.broadcasted_iota(jnp.int32, (d, s, 128), 0)
        hit = labels[None] == cls
        logpt_t = jnp.sum(jnp.where(hit, logpt, 0.0), axis=0)   # gathered log-prob
        pt = jnp.exp(logpt_t)                         # as in the module: exp of gathered logpt
        wt = _pow(jnp.maximum(1.0 - pt, 0.0), gamma)
        # -(1-pt)^g * logpt_t / normalizor  ==  wt * logpt_t / neg_norm   (no negations)
        nfl_row = wt * logpt_t * pl.reciprocal(neg_norm)

        # ---- RCELoss (beta / mean applied in wrapper) ----
        # one_hot(labels, C)[:, 1:] is 1.0 at column (label-1) when label>=1 and 1e-4
        # elsewhere, so -sum(p*log(onehot)) == -log(1e-4) * (sum(p) - p[label-1]).
        p = jnp.clip(pt_all, EPS, 1.0)
        sum_p = jnp.sum(p, axis=0)
        hit1 = (labels - 1)[None] == cls              # label-1 shift on the (S,128) row only
        p_hot = jnp.sum(jnp.where(hit1, p, 0.0), axis=0)
        rce_row = NEG_LOG_ONEHOT_MIN * (sum_p - p_hot)

        if needs_mask:
            sub = jax.lax.broadcasted_iota(jnp.int32, (s, 128), 0)
            lane = jax.lax.broadcasted_iota(jnp.int32, (s, 128), 1)
            idx = pl.program_id(0) * tile_n + sub * 128 + lane
            valid = idx < n_valid
            nfl_row = jnp.where(valid, nfl_row, 0.0)
            rce_row = jnp.where(valid, rce_row, 0.0)

        # Per-tile partial sums folded to one full vreg -> unmasked (8,128) stores.
        nfl_ref[0] = _fold_to_vreg(nfl_row, s)
        rce_ref[0] = _fold_to_vreg(rce_row, s)

    return kernel


def _round_up(x, m):
    return ((x + m - 1) // m) * m


def nfl_and_rce(pred, labels, *, num_classes=10, gamma=0.5, alpha=1.0, beta=1.0,
                tile_n=16384):
    """pred: (N, num_classes-1) logits (any float dtype); labels: (N,) int class ids."""
    n, d = pred.shape
    assert d == num_classes - 1, "pred must have num_classes-1 logit columns"

    # Sample tile must be a multiple of 1024 so the (S,128) block has S % 8 == 0.
    tile_n = max(1024, (int(tile_n) // 1024) * 1024)
    tile_n = min(tile_n, _round_up(n, 1024))
    n_pad = _round_up(n, tile_n)
    num_tiles = n_pad // tile_n
    s = tile_n // 128

    # Layout plumbing (one XLA copy): classes -> leading slabs, samples -> (sublane, lane).
    pred_r = jnp.pad(pred, ((0, n_pad - n), (0, 0))).T.reshape(d, n_pad // 128, 128)
    labels_r = jnp.pad(labels.astype(jnp.int32), (0, n_pad - n)).reshape(n_pad // 128, 128)

    kernel = make_nfl_rce_kernel(d, tile_n, gamma, n, n_pad)
    # Per-tile input block is d*tile_n*4 bytes (9*16384*4 ≈ 576 KiB) plus labels, ×2
    # pipeline buffers, plus a handful of (d,S,128) f32 temporaries — comfortably
    # under the default scoped VMEM on v5e/v6e/v7x.
    nfl_p, rce_p = pl.pallas_call(
        kernel,
        out_shape=(jax.ShapeDtypeStruct((num_tiles, 8, 128), jnp.float32),
                   jax.ShapeDtypeStruct((num_tiles, 8, 128), jnp.float32)),
        grid=(num_tiles,),
        in_specs=[
            pl.BlockSpec((d, s, 128), lambda i: (0, i, 0)),
            pl.BlockSpec((s, 128), lambda i: (i, 0)),
        ],
        out_specs=(
            pl.BlockSpec((1, 8, 128), lambda i: (i, 0, 0)),
            pl.BlockSpec((1, 8, 128), lambda i: (i, 0, 0)),
        ),
        compiler_params=pltpu.CompilerParams(dimension_semantics=("parallel",)),
    )(pred_r, labels_r)

    inv_n = 1.0 / n
    return alpha * inv_n * jnp.sum(nfl_p) + beta * inv_n * jnp.sum(rce_p)


def nfl_and_rce_reference(pred, labels, *, num_classes=10, gamma=0.5,
                          alpha=1.0, beta=1.0):
    """Pure-JAX reference mirroring the PyTorch module, for a sanity check."""
    pred = pred.astype(jnp.float32)
    n, d = pred.shape
    logpt = jax.nn.log_softmax(pred, axis=1)
    normalizor = jnp.sum(-(1.0 - jnp.exp(logpt)) ** gamma * logpt, axis=1)
    logpt_t = jnp.take_along_axis(logpt, labels.reshape(-1, 1), axis=1).reshape(-1)
    pt = jnp.exp(logpt_t)
    nfl = alpha * (-(1.0 - pt) ** gamma * logpt_t) / normalizor
    nfl_loss = jnp.mean(nfl)

    p = jnp.clip(jax.nn.softmax(pred, axis=1), EPS, 1.0)
    one_hot = jax.nn.one_hot(labels, num_classes, dtype=jnp.float32)
    one_hot = jnp.clip(one_hot, ONEHOT_MIN, 1.0)[:, 1:]
    rce = -jnp.sum(p * jnp.log(one_hot), axis=1)
    rce_loss = beta * jnp.mean(rce)
    return nfl_loss + rce_loss


if __name__ == "__main__":
    num_classes = 10
    D = num_classes - 1

    key = jax.random.PRNGKey(0)
    k1, k2, k3, k4 = jax.random.split(key, 4)

    # Small single-tile test (N padded 64 -> 1024, mask path exercised).
    N1 = 64
    pred1 = jax.random.normal(k1, (N1, D), dtype=jnp.float32)
    labels1 = jax.random.randint(k2, (N1,), 0, D, dtype=jnp.int32)
    out1 = jax.block_until_ready(
        nfl_and_rce(pred1, labels1, num_classes=num_classes, gamma=0.5,
                    alpha=1.0, beta=1.0))
    ref1 = jax.block_until_ready(
        nfl_and_rce_reference(pred1, labels1, num_classes=num_classes, gamma=0.5,
                              alpha=1.0, beta=1.0))
    if not np.allclose(np.asarray(out1), np.asarray(ref1), rtol=1e-3, atol=1e-4):
        raise AssertionError(f"mismatch (single tile): kernel={out1} ref={ref1}")

    # Multi-tile + ragged-N test (grid = 3 tiles of 1024, padded tail masked out).
    N2 = 2500
    pred2 = jax.random.normal(k3, (N2, D), dtype=jnp.float32)
    labels2 = jax.random.randint(k4, (N2,), 0, D, dtype=jnp.int32)
    out2 = jax.block_until_ready(
        nfl_and_rce(pred2, labels2, num_classes=num_classes, gamma=0.5,
                    alpha=1.0, beta=1.0, tile_n=1024))
    ref2 = jax.block_until_ready(
        nfl_and_rce_reference(pred2, labels2, num_classes=num_classes, gamma=0.5,
                              alpha=1.0, beta=1.0))
    if not np.allclose(np.asarray(out2), np.asarray(ref2), rtol=1e-3, atol=1e-4):
        raise AssertionError(f"mismatch (multi tile): kernel={out2} ref={ref2}")

    print("KERNEL_OK")
</pallas_src>

<mosaic_0001>
module attributes {stable_mosaic.version = 11 : i64} {
  func.func @kernel(%arg0: i32, %arg1: memref<9x8x128xf32, #tpu.memory_space<vmem>>, %arg2: memref<8x128xi32, #tpu.memory_space<vmem>>, %arg3: memref<1x8x128xf32, #tpu.memory_space<vmem>>, %arg4: memref<1x8x128xf32, #tpu.memory_space<vmem>>) attributes {dimension_semantics = [#tpu.dimension_semantics<parallel>], iteration_bounds = array<i64: 1>, scalar_prefetch = 0 : i64, scratch_operands = 0 : i64, tpu.core_type = #tpu.core_type<tc>, window_params = [{transform_indices = @transform_0, window_bounds = array<i64: 9, 8, 128>}, {transform_indices = @transform_1, window_bounds = array<i64: 8, 128>}, {transform_indices = @transform_2, window_bounds = array<i64: 1, 8, 128>}, {transform_indices = @transform_3, window_bounds = array<i64: 1, 8, 128>}]} {
    %c0 = arith.constant 0 : index
    %c0_0 = arith.constant 0 : index
    %c0_1 = arith.constant 0 : index
    %0 = vector.load %arg1[%c0, %c0_0, %c0_1] : memref<9x8x128xf32, #tpu.memory_space<vmem>>, vector<9x8x128xf32>
    %c0_2 = arith.constant 0 : index
    %c0_3 = arith.constant 0 : index
    %1 = vector.load %arg2[%c0_2, %c0_3] : memref<8x128xi32, #tpu.memory_space<vmem>>, vector<8x128xi32>
    %cst = arith.constant dense<0xFF800000> : vector<8x128xf32>
    %2 = vector.multi_reduction <maximumf>, %0, %cst [0] : vector<9x8x128xf32> to vector<8x128xf32>
    %3 = vector.shape_cast %2 : vector<8x128xf32> to vector<1x8x128xf32>
    %4 = vector.broadcast %3 : vector<1x8x128xf32> to vector<9x8x128xf32>
    %5 = arith.subf %0, %4 : vector<9x8x128xf32>
    %6 = math.exp %5 : vector<9x8x128xf32>
    %cst_4 = arith.constant dense<0.000000e+00> : vector<8x128xf32>
    %7 = vector.multi_reduction <add>, %6, %cst_4 [0] : vector<9x8x128xf32> to vector<8x128xf32>
    %8 = tpu.reciprocal %7 : vector<8x128xf32> -> vector<8x128xf32>
    %9 = math.log %7 : vector<8x128xf32>
    %10 = vector.shape_cast %9 : vector<8x128xf32> to vector<1x8x128xf32>
    %11 = vector.broadcast %10 : vector<1x8x128xf32> to vector<9x8x128xf32>
    %12 = arith.subf %5, %11 : vector<9x8x128xf32>
    %13 = vector.shape_cast %8 : vector<8x128xf32> to vector<1x8x128xf32>
    %14 = vector.broadcast %13 : vector<1x8x128xf32> to vector<9x8x128xf32>
    %15 = arith.mulf %6, %14 : vector<9x8x128xf32>
    %cst_5 = arith.constant 1.000000e+00 : f32
    %16 = vector.broadcast %cst_5 : f32 to vector<9x8x128xf32>
    %17 = arith.subf %16, %15 : vector<9x8x128xf32>
    %cst_6 = arith.constant 0.000000e+00 : f32
    %18 = vector.broadcast %cst_6 : f32 to vector<9x8x128xf32>
    %19 = arith.maximumf %17, %18 : vector<9x8x128xf32>
    %20 = math.sqrt %19 : vector<9x8x128xf32>
    %21 = arith.mulf %20, %12 : vector<9x8x128xf32>
    %cst_7 = arith.constant dense<0.000000e+00> : vector<8x128xf32>
    %22 = vector.multi_reduction <add>, %21, %cst_7 [0] : vector<9x8x128xf32> to vector<8x128xf32>
    %23 = tpu.iota {dimensions = array<i32: 0>} : vector<9x8x128xi32>
    %24 = vector.shape_cast %1 : vector<8x128xi32> to vector<1x8x128xi32>
    %25 = vector.broadcast %24 : vector<1x8x128xi32> to vector<9x8x128xi32>
    %26 = arith.cmpi eq, %25, %23 : vector<9x8x128xi32>
    %cst_8 = arith.constant 0.000000e+00 : f32
    %27 = vector.broadcast %cst_8 : f32 to vector<9x8x128xf32>
    %28 = arith.select %26, %12, %27 : vector<9x8x128xi1>, vector<9x8x128xf32>
    %cst_9 = arith.constant dense<0.000000e+00> : vector<8x128xf32>
    %29 = vector.multi_reduction <add>, %28, %cst_9 [0] : vector<9x8x128xf32> to vector<8x128xf32>
    %30 = math.exp %29 : vector<8x128xf32>
    %cst_10 = arith.constant 1.000000e+00 : f32
    %31 = vector.broadcast %cst_10 : f32 to vector<8x128xf32>
    %32 = arith.subf %31, %30 : vector<8x128xf32>
    %cst_11 = arith.constant 0.000000e+00 : f32
    %33 = vector.broadcast %cst_11 : f32 to vector<8x128xf32>
    %34 = arith.maximumf %32, %33 : vector<8x128xf32>
    %35 = math.sqrt %34 : vector<8x128xf32>
    %36 = arith.mulf %35, %29 : vector<8x128xf32>
    %37 = tpu.reciprocal %22 : vector<8x128xf32> -> vector<8x128xf32>
    %38 = arith.mulf %36, %37 : vector<8x128xf32>
    %cst_12 = arith.constant 1.000000e-07 : f32
    %cst_13 = arith.constant 1.000000e+00 : f32
    %39 = vector.broadcast %cst_12 : f32 to vector<9x8x128xf32>
    %40 = arith.maximumf %39, %15 : vector<9x8x128xf32>
    %41 = vector.broadcast %cst_13 : f32 to vector<9x8x128xf32>
    %42 = arith.minimumf %41, %40 : vector<9x8x128xf32>
    %cst_14 = arith.constant dense<0.000000e+00> : vector<8x128xf32>
    %43 = vector.multi_reduction <add>, %42, %cst_14 [0] : vector<9x8x128xf32> to vector<8x128xf32>
    %c1_i32 = arith.constant 1 : i32
    %44 = vector.broadcast %c1_i32 : i32 to vector<8x128xi32>
    %45 = arith.subi %1, %44 : vector<8x128xi32>
    %46 = vector.shape_cast %45 : vector<8x128xi32> to vector<1x8x128xi32>
    %47 = vector.broadcast %46 : vector<1x8x128xi32> to vector<9x8x128xi32>
    %48 = arith.cmpi eq, %47, %23 : vector<9x8x128xi32>
    %cst_15 = arith.constant 0.000000e+00 : f32
    %49 = vector.broadcast %cst_15 : f32 to vector<9x8x128xf32>
    %50 = arith.select %48, %42, %49 : vector<9x8x128xi1>, vector<9x8x128xf32>
    %cst_16 = arith.constant dense<0.000000e+00> : vector<8x128xf32>
    %51 = vector.multi_reduction <add>, %50, %cst_16 [0] : vector<9x8x128xf32> to vector<8x128xf32>
    %52 = arith.subf %43, %51 : vector<8x128xf32>
    %cst_17 = arith.constant 9.21034049 : f32
    %53 = vector.broadcast %cst_17 : f32 to vector<8x128xf32>
    %54 = arith.mulf %53, %52 : vector<8x128xf32>
    %55 = tpu.iota {dimensions = array<i32: 0>} : vector<8x128xi32>
    %56 = tpu.iota {dimensions = array<i32: 1>} : vector<8x128xi32>
    %c1024_i32 = arith.constant 1024 : i32
    %57 = arith.muli %arg0, %c1024_i32 : i32
    %c128_i32 = arith.constant 128 : i32
    %58 = vector.broadcast %c128_i32 : i32 to vector<8x128xi32>
    %59 = arith.muli %55, %58 : vector<8x128xi32>
    %60 = vector.broadcast %57 : i32 to vector<8x128xi32>
    %61 = arith.addi %60, %59 : vector<8x128xi32>
    %62 = arith.addi %61, %56 : vector<8x128xi32>
    %c64_i32 = arith.constant 64 : i32
    %63 = vector.broadcast %c64_i32 : i32 to vector<8x128xi32>
    %64 = arith.cmpi slt, %62, %63 : vector<8x128xi32>
    %cst_18 = arith.constant 0.000000e+00 : f32
    %65 = vector.broadcast %cst_18 : f32 to vector<8x128xf32>
    %66 = arith.select %64, %38, %65 : vector<8x128xi1>, vector<8x128xf32>
    %cst_19 = arith.constant 0.000000e+00 : f32
    %67 = vector.broadcast %cst_19 : f32 to vector<8x128xf32>
    %68 = arith.select %64, %54, %67 : vector<8x128xi1>, vector<8x128xf32>
    %c0_20 = arith.constant 0 : index
    %c0_21 = arith.constant 0 : index
    %c0_22 = arith.constant 0 : index
    %69 = vector.load %arg3[%c0_20, %c0_21, %c0_22] : memref<1x8x128xf32, #tpu.memory_space<vmem>>, vector<1x8x128xf32>
    %70 = vector.shape_cast %69 : vector<1x8x128xf32> to vector<8x128xf32>
    %71 = vector.shape_cast %66 : vector<8x128xf32> to vector<1x8x128xf32>
    tpu.vector_store %arg3[%c0_20, %c0_21, %c0_22], %71 {strides = array<i32>} : memref<1x8x128xf32, #tpu.memory_space<vmem>>, vector<1x8x128xf32>,
    %c0_23 = arith.constant 0 : index
    %c0_24 = arith.constant 0 : index
    %c0_25 = arith.constant 0 : index
    %72 = vector.load %arg4[%c0_23, %c0_24, %c0_25] : memref<1x8x128xf32, #tpu.memory_space<vmem>>, vector<1x8x128xf32>
    %73 = vector.shape_cast %72 : vector<1x8x128xf32> to vector<8x128xf32>
    %74 = vector.shape_cast %68 : vector<8x128xf32> to vector<1x8x128xf32>
    tpu.vector_store %arg4[%c0_23, %c0_24, %c0_25], %74 {strides = array<i32>} : memref<1x8x128xf32, #tpu.memory_space<vmem>>, vector<1x8x128xf32>,
    return
  }
  func.func @transform_0(%arg0: i32) -> (i32, i32, i32) {
    %c0_i32 = arith.constant 0 : i32
    %c0_i32_0 = arith.constant 0 : i32
    %c0_i32_1 = arith.constant 0 : i32
    return %c0_i32, %arg0, %c0_i32_0 : i32, i32, i32
  }
  func.func @transform_1(%arg0: i32) -> (i32, i32) {
    %c0_i32 = arith.constant 0 : i32
    %c0_i32_0 = arith.constant 0 : i32
    return %arg0, %c0_i32 : i32, i32
  }
  func.func @transform_2(%arg0: i32) -> (i32, i32, i32) {
    %c0_i32 = arith.constant 0 : i32
    %c0_i32_0 = arith.constant 0 : i32
    %c0_i32_1 = arith.constant 0 : i32
    return %arg0, %c0_i32, %c0_i32_0 : i32, i32, i32
  }
  func.func @transform_3(%arg0: i32) -> (i32, i32, i32) {
    %c0_i32 = arith.constant 0 : i32
    %c0_i32_0 = arith.constant 0 : i32
    %c0_i32_1 = arith.constant 0 : i32
    return %arg0, %c0_i32, %c0_i32_0 : i32, i32, i32
  }
}

</mosaic_0001>

<bundles_post_ra>
// kernel: tpu_custom_call.1
= control target key start
LH: loop header
LB: loop body
LE: loop exit
PB: predicated region body
PF: predicated region fallthrough
CT: control target
= control target key end

     0   :  { %9 = vsyncpa [#allocation3], 0  ;;  %s961_s0 = inlined_call_operand.hbm [shape: f32[9,8,128], index: 0, kind: input, shape index: {}]   ;;  %s962_s1 = inlined_call_operand.hbm [shape: s32[8,128], index: 1, kind: input, shape index: {}]   ;;  %s963_s2 = inlined_call_operand.hbm [shape: f32[1,8,128], index: 2, kind: output, shape index: {0}]   ;;  %s964_s3 = inlined_call_operand.hbm [shape: f32[1,8,128], index: 3, kind: output, shape index: {1}]  }
   0x1   :  { %10 = vsyncpa [#allocation6], 0 }
   0x2   :  { %11 = vsyncpa [#allocation4], 0 }
   0x3   :  { %12 = vsyncpa [#allocation9], 0  ;;  %s17_s14 = sshll.u32 %s961_s0, 4  ;;  %s593_s15 = smov [#allocation2]   ;;  %s18_s14 = int_to_ptr.hbm [resolvable:$true] %s17_s14 }
   0x4   :  { %s19_s16 = sshll.u32 %s593_s15, 4  ;;  %s31_s19 = sshll.u32 %s962_s1, 4  ;;  %s20_s16 = int_to_ptr.vmem [resolvable:$true] %s19_s16  ;;  %s32_s19 = int_to_ptr.hbm [resolvable:$true] %s31_s19 }
   0x5   :  { %s594_s20 = smov 128   ;;  %s595_s21 = smov 8  }
   0x6   :  { %25 = dma.hbm_to_vmem [thread:$0]  %s18_s14, 1152, %s20_s16, [#allocation3], %s594_s20, %s594_s20, %s595_s21  }
   0x7   :  { %s596_s22 = smov [#allocation5]  }
   0x8   :  { %s33_s23 = sshll.u32 %s596_s22, 4  ;;  %s34_s23 = int_to_ptr.vmem [resolvable:$true] %s33_s23 }
   0x9   :  { %36 = dma.hbm_to_vmem [thread:$0]  %s32_s19, 128, %s34_s23, [#allocation6]  }
   0xa   :  { %585 = dma.done.wait [#allocation3], 1152  }
   0xb   :  { %586 = vsyncadd [#allocation3], 4294966144 }
   0xc   :  { %587 = dma.done.wait [#allocation6], 128  }
   0xd   :  { %588 = vsyncadd [#allocation6], 4294967168  ;;  %v45_v0 = vld [vmem:[#allocation2] sm:$0xff]  ;;  %v46_v1 = vld [vmem:[#allocation2 + $0x8] sm:$0xff]  ;;  %s597_s0 = smov [#allocation8]   ;;  %s420_s26 = sshll.u32 %s964_s3, 4  ;;  %s421_s26 = int_to_ptr.hbm [resolvable:$true] %s420_s26 }
   0xe   :  { %v47_v2 = vld [vmem:[#allocation2 + $0x10] sm:$0xff]  ;;  %v48_v3 = vld [vmem:[#allocation2 + $0x18] sm:$0xff]  ;;  %v49_v4 = vld [vmem:[#allocation2 + $0x20] sm:$0xff]  ;;  %s418_s1 = sshll.u32 %s597_s0, 4  ;;  %s598_s3 = smov [#allocation7]   ;;  %s419_s1 = int_to_ptr.vmem [resolvable:$true] %s418_s1 }
   0xf   :  { %v50_v5 = vld [vmem:[#allocation2 + $0x28] sm:$0xff]  ;;  %v51_v6 = vld [vmem:[#allocation2 + $0x30] sm:$0xff]  ;;  %v52_v7 = vld [vmem:[#allocation2 + $0x38] sm:$0xff]  ;;  %v55_v9 = vmax.f32 %v45_v0, %v49_v4  ;;  %s407_s27 = sshll.u32 %s598_s3, 4  ;;  %s409_s30 = sshll.u32 %s963_s2, 4  ;;  %s408_s27 = int_to_ptr.vmem [resolvable:$true] %s407_s27  ;;  %s410_s30 = int_to_ptr.hbm [resolvable:$true] %s409_s30 }
  0x10   :  { %v53_v8 = vld [vmem:[#allocation2 + $0x40] sm:$0xff]  ;;  %v56_v10 = vmax.f32 %v46_v1, %v50_v5  ;;  %v57_v11 = vmax.f32 %v47_v2, %v51_v6  ;;  %v58_v12 = vmax.f32 %v48_v3, %v52_v7  ;;  %v652_v60 = vld [vmem:[#allocation5] sm:$0xff] }
  0x11   :  { %v59_v13 = vmax.f32 %v55_v9, %v53_v8  ;;  %vm275_vm4 = vcmp.eq.s32.totalorder %v652_v60, 0  ;;  %vm276_vm5 = vcmp.eq.s32.totalorder %v652_v60, 1  ;;  %vm277_vm6 = vcmp.eq.s32.totalorder %v652_v60, 2 }
  0x12   :  { %v61_v14 = vmax.f32 %v57_v11, %v58_v12  ;;  %vm278_vm7 = vcmp.eq.s32.totalorder %v652_v60, 3  ;;  %vm279_vm8 = vcmp.eq.s32.totalorder %v652_v60, 4  ;;  %vm280_vm9 = vcmp.eq.s32.totalorder %v652_v60, 5 }
  0x13   :  { %v60_v15 = vmax.f32 %v59_v13, %v56_v10  ;;  %vm281_vm10 = vcmp.eq.s32.totalorder %v652_v60, 6  ;;  %vm282_vm11 = vcmp.eq.s32.totalorder %v652_v60, 7  ;;  %vm283_vm12 = vcmp.eq.s32.totalorder %v652_v60, 8 }
  0x15   :  { %v62_v16 = vmax.f32 %v60_v15, %v61_v14 }
  0x17   :  { %v625_v17 = vsub.f32 %v45_v0, %v62_v16  ;;  %v627_v18 = vsub.f32 %v46_v1, %v62_v16  ;;  %v629_v19 = vsub.f32 %v47_v2, %v62_v16  ;;  %v631_v20 = vsub.f32 %v48_v3, %v62_v16 }
  0x18   :  { %v633_v21 = vsub.f32 %v49_v4, %v62_v16  ;;  %v638_v25 = vsub.f32 %v50_v5, %v62_v16  ;;  %v641_v27 = vsub.f32 %v51_v6, %v62_v16  ;;  %v644_v29 = vsub.f32 %v52_v7, %v62_v16 }
  0x19   :  { %v72_v22 = vmul.f32 1.442695, %v625_v17  ;;  %v74_v23 = vmul.f32 1.442695, %v627_v18  ;;  %v76_v24 = vmul.f32 1.442695, %v629_v19  ;;  %v647_v31 = vsub.f32 %v53_v8, %v62_v16 }
  0x1a   :  { %v78_v26 = vmul.f32 1.442695, %v631_v20  ;;  %v80_v28 = vmul.f32 1.442695, %v633_v21  ;;  %v82_v30 = vmul.f32 1.442695, %v638_v25 }
  0x1b   :  { %443 = vpow2.f32 %v72_v22  ;;  %v84_v32 = vmul.f32 1.442695, %v641_v27  ;;  %v86_v35 = vmul.f32 1.442695, %v644_v29  ;;  %v88_v39 = vmul.f32 1.442695, %v647_v31 }
  0x1c   :  { %445 = vpow2.f32 %v74_v23 }
  0x1d   :  { %447 = vpow2.f32 %v76_v24 }
  0x1e   :  { %449 = vpow2.f32 %v78_v26 }
  0x1f   :  { %451 = vpow2.f32 %v80_v28 }
  0x20   :  { %453 = vpow2.f32 %v82_v30 }
  0x21   :  { %v444_v33 = vpop.eup %443  ;;  %455 = vpow2.f32 %v84_v32 }
  0x22   :  { %v446_v34 = vpop.eup %445  ;;  %457 = vpow2.f32 %v86_v35 }
  0x23   :  { %v448_v36 = vpop.eup %447  ;;  %v90_v37 = vadd.f32 %v446_v34, %v444_v33  ;;  %459 = vpow2.f32 %v88_v39 }
  0x24   :  { %v450_v38 = vpop.eup %449 }
  0x25   :  { %v91_v40 = vadd.f32 %v448_v36, %v90_v37  ;;  %v452_v41 = vpop.eup %451 }
  0x26   :  { %v454_v43 = vpop.eup %453 }
  0x27   :  { %v92_v42 = vadd.f32 %v450_v38, %v91_v40  ;;  %v456_v45 = vpop.eup %455 }
  0x28   :  { %v458_v47 = vpop.eup %457 }
  0x29   :  { %v93_v44 = vadd.f32 %v452_v41, %v92_v42  ;;  %v460_v49 = vpop.eup %459 }
  0x2b   :  { %v94_v46 = vadd.f32 %v454_v43, %v93_v44 }
  0x2d   :  { %v95_v48 = vadd.f32 %v456_v45, %v94_v46 }
  0x2f   :  { %v96_v50 = vadd.f32 %v458_v47, %v95_v48 }
  0x31   :  { %v97_v51 = vadd.f32 %v460_v49, %v96_v50 }
  0x33   :  { %461 = vrcp.f32 %v97_v51  ;;  %v109_v54 = vand.u32 2147483648, %v97_v51  ;;  %vm103_vm0 = vweird.f32 %v97_v51  ;;  %v107_v56 = vand.u32 2147483647, %v97_v51 }
  0x34   :  { %463 = vlog2.f32 %v97_v51 }
  0x35   :  { %v110_v59 = vor.u32 1.1754944e-38, %v109_v54  ;;  %vm108_vm3 = vcmp.eq.f32.partialorder %v107_v56, 8.507059e+37 }
  0x39   :  { %v462_v52 = vpop.eup %461 }
  0x3a   :  { %v99_v53 = vmul.f32 %v462_v52, %v97_v51  ;;  %vm104_vm1 = vweird.f32 %v462_v52  ;;  %v464_v57 = vpop.eup %463 }
  0x3b   :  { %vm105_vm2 = vmor %vm103_vm0, %vm104_vm1  ;;  %v113_v62 = vmul.f32 0.6931472, %v464_v57 }
  0x3c   :  { %v100_v55 = vsub.f32 1.0, %v99_v53 }
  0x3d   :  { %v668_v5 = vsub.f32 %v625_v17, %v113_v62  ;;  %v684_v13 = vsub.f32 %v627_v18, %v113_v62  ;;  %v690_v17 = vsub.f32 %v629_v19, %v113_v62  ;;  %v698_v26 = vsub.f32 %v631_v20, %v113_v62 }
  0x3e   :  { %v101_v58 = vmul.f32 %v462_v52, %v100_v55  ;;  %v707_v32 = vsub.f32 %v633_v21, %v113_v62  ;;  %v717_v20 = vsub.f32 %v641_v27, %v113_v62  ;;  %v726_v21 = vsub.f32 %v647_v31, %v113_v62 }
  0x3f   :  { %v285_v31 = vsel %vm276_vm5, %v684_v13, 0.0  ;;  %v753_v39 = vsel %vm278_vm7, %v698_v26, 0.0 }
  0x40   :  { %v102_v61 = vadd.f32 %v462_v52, %v101_v58  ;;  %v758_v40 = vsel %vm279_vm8, %v707_v32, 0.0  ;;  %v780_v48 = vsel %vm283_vm12, %v726_v21, 0.0 }
  0x42   :  { %v106_v63 = vsel %vm105_vm2, %v462_v52, %v102_v61 }
  0x43   :  { %v111_v0 = vsel %vm108_vm3, %v110_v59, %v106_v63 }
  0x44   :  { %v656_v1 = vmul.f32 %v444_v33, %v111_v0  ;;  %v658_v2 = vmul.f32 %v446_v34, %v111_v0  ;;  %v660_v3 = vmul.f32 %v448_v36, %v111_v0  ;;  %v662_v4 = vmul.f32 %v450_v38, %v111_v0 }
  0x45   :  { %v670_v6 = vmul.f32 %v452_v41, %v111_v0  ;;  %v672_v7 = vmul.f32 %v454_v43, %v111_v0  ;;  %v674_v8 = vmul.f32 %v456_v45, %v111_v0  ;;  %v678_v9 = vmul.f32 %v458_v47, %v111_v0 }
  0x46   :  { %v132_v10 = vsub.f32 1.0, %v656_v1  ;;  %v133_v11 = vsub.f32 1.0, %v658_v2  ;;  %v134_v12 = vsub.f32 1.0, %v660_v3  ;;  %v135_v14 = vsub.f32 1.0, %v662_v4 }
  0x47   :  { %v136_v15 = vsub.f32 1.0, %v670_v6  ;;  %v137_v16 = vsub.f32 1.0, %v672_v7  ;;  %v138_v22 = vsub.f32 1.0, %v674_v8  ;;  %v700_v18 = vmul.f32 %v460_v49, %v111_v0 }
  0x48   :  { %v693_v23 = vmax.f32 %v132_v10, 0.0  ;;  %v695_v24 = vmax.f32 %v133_v11, 0.0  ;;  %v702_v28 = vmax.f32 %v134_v12, 0.0  ;;  %v704_v30 = vmax.f32 %v135_v14, 0.0 }
  0x49   :  { %v139_v19 = vsub.f32 1.0, %v678_v9  ;;  %v710_v33 = vmax.f32 %v136_v15, 0.0  ;;  %v714_v34 = vsub.f32 %v638_v25, %v113_v62  ;;  %v719_v35 = vmax.f32 %v137_v16, 0.0 }
  0x4a   :  { %465 = vrsqrt.f32 %v693_v23  ;;  %v723_v36 = vsub.f32 %v644_v29, %v113_v62  ;;  %v728_v37 = vmax.f32 %v138_v22, 0.0  ;;  %v140_v25 = vsub.f32 1.0, %v700_v18 }
  0x4b   :  { %467 = vrsqrt.f32 %v695_v24  ;;  %v735_v27 = vmax.f32 %v139_v19, 0.0  ;;  %v284_v29 = vsel %vm275_vm4, %v668_v5, 0.0  ;;  %v748_v38 = vsel %vm277_vm6, %v690_v17, 0.0 }
  0x4c   :  { %469 = vrsqrt.f32 %v702_v28  ;;  %v764_v42 = vsel %vm280_vm9, %v714_v34, 0.0  ;;  %v769_v43 = vsel %vm281_vm10, %v717_v20, 0.0  ;;  %v772_v44 = vsel %vm282_vm11, %v723_v36, 0.0 }
  0x4d   :  { %471 = vrsqrt.f32 %v704_v30  ;;  %v774_v46 = vmax.f32 %v140_v25, 0.0  ;;  %v782_v49 = vadd.f32 %v285_v31, %v284_v29  ;;  %vm157_vm13 = vcmp.eq.f32.partialorder %v693_v23, inf }
  0x4e   :  { %473 = vrsqrt.f32 %v710_v33  ;;  %v160_v51 = vand.u32 2147483648, %v693_v23  ;;  %vm169_vm14 = vcmp.eq.f32.partialorder %v695_v24, inf  ;;  %vm159_vm15 = vcmp.eq.f32.partialorder %v693_v23, 0.0 }
  0x4f   :  { %475 = vrsqrt.f32 %v719_v35  ;;  %vm181_vm0 = vcmp.eq.f32.partialorder %v702_v28, inf  ;;  %vm171_vm1 = vcmp.eq.f32.partialorder %v695_v24, 0.0  ;;  %vm193_vm2 = vcmp.eq.f32.partialorder %v704_v30, inf }
  0x50   :  { %v466_v41 = vpop.eup %465  ;;  %477 = vrsqrt.f32 %v728_v37  ;;  %vm183_vm3 = vcmp.eq.f32.partialorder %v702_v28, 0.0  ;;  %vm205_vm4 = vcmp.eq.f32.partialorder %v710_v33, inf  ;;  %vm195_vm5 = vcmp.eq.f32.partialorder %v704_v30, 0.0 }
  0x51   :  { %v468_v45 = vpop.eup %467  ;;  %v151_v47 = vmul.f32 %v466_v41, %v693_v23  ;;  %479 = vrsqrt.f32 %v735_v27  ;;  %vm207_vm6 = vcmp.eq.f32.partialorder %v710_v33, 0.0  ;;  %vm217_vm7 = vcmp.eq.f32.partialorder %v719_v35, inf }
  0x52   :  { %v470_v50 = vpop.eup %469  ;;  %v163_v52 = vmul.f32 %v468_v45, %v695_v24  ;;  %481 = vrsqrt.f32 %v774_v46  ;;  %vm229_vm8 = vcmp.eq.f32.partialorder %v728_v37, inf  ;;  %vm219_vm9 = vcmp.eq.f32.partialorder %v719_v35, 0.0 }
  0x53   :  { %v472_v53 = vpop.eup %471  ;;  %v152_v54 = vmul.f32 %v466_v41, %v151_v47  ;;  %v175_v56 = vmul.f32 %v470_v50, %v702_v28  ;;  %vm231_vm10 = vcmp.eq.f32.partialorder %v728_v37, 0.0  ;;  %vm241_vm11 = vcmp.eq.f32.partialorder %v735_v27, inf }
  0x54   :  { %v474_v58 = vpop.eup %473  ;;  %v164_v59 = vmul.f32 %v468_v45, %v163_v52  ;;  %v187_v61 = vmul.f32 %v472_v53, %v704_v30  ;;  %vm243_vm12 = vcmp.eq.f32.partialorder %v735_v27, 0.0 }
  0x55   :  { %v476_v0 = vpop.eup %475  ;;  %v153_v10 = vmul.f32 0.5, %v152_v54  ;;  %v176_v11 = vmul.f32 %v470_v50, %v175_v56  ;;  %v199_v12 = vmul.f32 %v474_v58, %v710_v33 }
  0x56   :  { %v478_v15 = vpop.eup %477  ;;  %v165_v16 = vmul.f32 0.5, %v164_v59  ;;  %v188_v22 = vmul.f32 %v472_v53, %v187_v61  ;;  %v211_v19 = vmul.f32 %v476_v0, %v719_v35 }
  0x57   :  { %v154_v29 = vsub.f32 1.5, %v153_v10  ;;  %v177_v31 = vmul.f32 0.5, %v176_v11  ;;  %v200_v47 = vmul.f32 %v474_v58, %v199_v12  ;;  %v223_v52 = vmul.f32 %v478_v15, %v728_v37  ;;  %v480_v54 = vpop.eup %479 }
  0x58   :  { %v166_v56 = vsub.f32 1.5, %v165_v16  ;;  %v189_v63 = vmul.f32 0.5, %v188_v22  ;;  %v212_v59 = vmul.f32 %v476_v0, %v211_v19  ;;  %v235_v16 = vmul.f32 %v480_v54, %v735_v27 }
  0x59   :  { %v155_v61 = vmul.f32 %v466_v41, %v154_v29  ;;  %v178_v14 = vsub.f32 1.5, %v177_v31  ;;  %v201_v62 = vmul.f32 0.5, %v200_v47  ;;  %v224_v10 = vmul.f32 %v478_v15, %v223_v52 }
  0x5a   :  { %v167_v11 = vmul.f32 %v468_v45, %v166_v56  ;;  %v190_v12 = vsub.f32 1.5, %v189_v63  ;;  %v213_v25 = vmul.f32 0.5, %v212_v59  ;;  %v236_v47 = vmul.f32 %v480_v54, %v235_v16  ;;  %v482_v59 = vpop.eup %481 }
  0x5b   :  { %v156_v22 = vmul.f32 %v155_v61, %v693_v23  ;;  %v179_v19 = vmul.f32 %v470_v50, %v178_v14  ;;  %v202_v57 = vsub.f32 1.5, %v201_v62  ;;  %v225_v55 = vmul.f32 0.5, %v224_v10 }
  0x5c   :  { %v168_v41 = vmul.f32 %v167_v11, %v695_v24  ;;  %v191_v29 = vmul.f32 %v472_v53, %v190_v12  ;;  %v214_v31 = vsub.f32 1.5, %v213_v25  ;;  %v294_v14 = vadd.f32 %v782_v49, %v748_v38 }
  0x5d   :  { %v158_v45 = vsel %vm157_vm13, %v693_v23, %v156_v22  ;;  %v180_v63 = vmul.f32 %v179_v19, %v702_v28  ;;  %v203_v52 = vmul.f32 %v474_v58, %v202_v57  ;;  %v226_v56 = vsub.f32 1.5, %v225_v55 }
  0x5e   :  { %v170_v50 = vsel %vm169_vm14, %v695_v24, %v168_v41  ;;  %v192_v62 = vmul.f32 %v191_v29, %v704_v30  ;;  %v215_v53 = vmul.f32 %v476_v0, %v214_v31  ;;  %v161_v25 = vsel %vm159_vm15, %v160_v51, %v158_v45 }
  0x5f   :  { %v182_v55 = vsel %vm181_vm0, %v702_v28, %v180_v63  ;;  %v204_v57 = vmul.f32 %v203_v52, %v710_v33  ;;  %v227_v58 = vmul.f32 %v478_v15, %v226_v56  ;;  %v965_v61 = vand.u32 2147483648, %v695_v24 }
  0x60   :  { %v194_v38 = vsel %vm193_vm2, %v704_v30, %v192_v62  ;;  %v216_v49 = vmul.f32 %v215_v53, %v719_v35  ;;  %v237_v23 = vmul.f32 0.5, %v236_v47  ;;  %v966_v51 = vand.u32 2147483648, %v702_v28 }
  0x61   :  { %v173_v0 = vsel %vm171_vm1, %v965_v61, %v170_v50  ;;  %v206_v15 = vsel %vm205_vm4, %v710_v33, %v204_v57  ;;  %v228_v11 = vmul.f32 %v227_v58, %v728_v37  ;;  %v247_v24 = vmul.f32 %v482_v59, %v774_v46 }
  0x62   :  { %v185_v10 = vsel %vm183_vm3, %v966_v51, %v182_v55  ;;  %v238_v12 = vsub.f32 1.5, %v237_v23  ;;  %v258_v16 = vmul.f32 %v161_v25, %v668_v5  ;;  %v295_v22 = vadd.f32 %v294_v14, %v753_v39 }
  0x63   :  { %v967_v19 = vand.u32 2147483648, %v704_v30  ;;  %v248_v41 = vmul.f32 %v482_v59, %v247_v24  ;;  %v259_v29 = vmul.f32 %v173_v0, %v684_v13  ;;  %v968_v31 = vand.u32 2147483648, %v710_v33 }
  0x64   :  { %v218_v5 = vsel %vm217_vm7, %v719_v35, %v216_v49  ;;  %v239_v39 = vmul.f32 %v480_v54, %v238_v12  ;;  %v260_v45 = vmul.f32 %v185_v10, %v690_v17  ;;  %v230_v30 = vsel %vm229_vm8, %v728_v37, %v228_v11 }
  0x65   :  { %v197_v28 = vsel %vm195_vm5, %v967_v19, %v194_v38  ;;  %v209_v47 = vsel %vm207_vm6, %v968_v31, %v206_v15  ;;  %v244_v63 = vand.u32 2147483648, %v735_v27  ;;  %v249_v52 = vmul.f32 0.5, %v248_v41 }
  0x66   :  { %vm253_vm13 = vcmp.eq.f32.partialorder %v774_v46, inf  ;;  %v240_v13 = vmul.f32 %v239_v39, %v735_v27  ;;  %v261_v33 = vmul.f32 %v197_v28, %v698_v26  ;;  %v267_v56 = vadd.f32 %v259_v29, %v258_v16 }
  0x67   :  { %v296_v50 = vadd.f32 %v295_v22, %v758_v40  ;;  %v969_v54 = vand.u32 2147483648, %v719_v35  ;;  %v250_v62 = vsub.f32 1.5, %v249_v52  ;;  %v262_v53 = vmul.f32 %v209_v47, %v707_v32 }
  0x68   :  { %v333_v14 = vmax.f32 %v656_v1, 1e-07  ;;  %v242_v25 = vsel %vm241_vm11, %v735_v27, %v240_v13  ;;  %v268_v55 = vadd.f32 %v267_v56, %v260_v45  ;;  %v334_v57 = vmax.f32 %v658_v2, 1e-07 }
  0x69   :  { %v221_v17 = vsel %vm219_vm9, %v969_v54, %v218_v5  ;;  %v297_v26 = vadd.f32 %v296_v50, %v764_v42  ;;  %v970_v40 = vand.u32 2147483648, %v728_v37  ;;  %v251_v58 = vmul.f32 %v482_v59, %v250_v62 }
  0x6a   :  { %vm255_vm14 = vcmp.eq.f32.partialorder %v774_v46, 0.0  ;;  %v335_v32 = vmax.f32 %v660_v3, 1e-07  ;;  %v256_v1 = vand.u32 2147483648, %v774_v46  ;;  %v263_v61 = vmul.f32 %v221_v17, %v714_v34 }
  0x6b   :  { %v233_v35 = vsel %vm231_vm10, %v970_v40, %v230_v30  ;;  %v269_v0 = vadd.f32 %v268_v55, %v261_v33  ;;  %v298_v38 = vadd.f32 %v297_v26, %v769_v43  ;;  %v245_v2 = vsel %vm243_vm12, %v244_v63, %v242_v25 }
  0x6c   :  { %v252_v42 = vmul.f32 %v251_v58, %v774_v46  ;;  %v336_v37 = vmax.f32 %v662_v4, 1e-07  ;;  %v342_v49 = vmin.f32 %v333_v14, 1.0  ;;  %v264_v59 = vmul.f32 %v233_v35, %v717_v20 }
  0x6d   :  { %v270_v23 = vadd.f32 %v269_v0, %v262_v53  ;;  %v299_v3 = vadd.f32 %v298_v38, %v772_v44  ;;  %v343_v51 = vmin.f32 %v334_v57, 1.0  ;;  %v337_v43 = vmax.f32 %v670_v6, 1e-07 }
  0x6e   :  { %v254_v34 = vsel %vm253_vm13, %v774_v46, %v252_v42  ;;  %v344_v10 = vmin.f32 %v335_v32, 1.0  ;;  %v907_v27 = vadd.s32 4294967295, %v652_v60  ;;  %v265_v15 = vmul.f32 %v245_v2, %v723_v36 }
  0x6f   :  { %v257_v4 = vsel %vm255_vm14, %v256_v1, %v254_v34  ;;  %v271_v20 = vadd.f32 %v270_v23, %v263_v61  ;;  %v913_v11 = vadd.f32 %v299_v3, %v780_v48  ;;  %v345_v44 = vmin.f32 %v336_v37, 1.0 }
  0x70   :  { %v351_v24 = vadd.f32 %v343_v51, %v342_v49  ;;  %v266_v12 = vmul.f32 %v257_v4, %v726_v21  ;;  %v338_v22 = vmax.f32 %v672_v7, 1e-07  ;;  %v346_v60 = vmin.f32 %v337_v43, 1.0 }
  0x71   :  { %v272_v16 = vadd.f32 %v271_v20, %v264_v59  ;;  %v301_v6 = vmul.f32 1.442695, %v913_v11  ;;  %vm360_vm15 = vcmp.eq.s32.totalorder %v907_v27, 0  ;;  %vm361_vm0 = vcmp.eq.s32.totalorder %v907_v27, 1 }
  0x72   :  { %v352_v19 = vadd.f32 %v351_v24, %v344_v10  ;;  %v339_v46 = vmax.f32 %v674_v8, 1e-07  ;;  %vm362_vm1 = vcmp.eq.s32.totalorder %v907_v27, 2  ;;  %v347_v21 = vmin.f32 %v338_v22, 1.0 }
  0x73   :  { %v273_v36 = vadd.f32 %v272_v16, %v265_v15  ;;  %483 = vpow2.f32 %v301_v6  ;;  %v369_v41 = vsel %vm360_vm15, %v342_v49, 0.0  ;;  %v370_v29 = vsel %vm361_vm0, %v343_v51, 0.0 }
  0x74   :  { %v353_v48 = vadd.f32 %v352_v19, %v345_v44  ;;  %vm363_vm2 = vcmp.eq.s32.totalorder %v907_v27, 3  ;;  %v371_v7 = vsel %vm362_vm1, %v344_v10, 0.0  ;;  %v340_v47 = vmax.f32 %v678_v9, 1e-07 }
  0x75   :  { %v922_v28 = vadd.f32 %v273_v36, %v266_v12  ;;  %v378_v5 = vadd.f32 %v370_v29, %v369_v41  ;;  %v348_v45 = vmin.f32 %v339_v46, 1.0  ;;  %vm364_vm3 = vcmp.eq.s32.totalorder %v907_v27, 4 }
  0x76   :  { %v354_v31 = vadd.f32 %v353_v48, %v346_v60  ;;  %v372_v30 = vsel %vm363_vm2, %v345_v44, 0.0  ;;  %v388_v13 = vlaneseq  ;;  %vm365_vm4 = vcmp.eq.s32.totalorder %v907_v27, 5 }
  0x77   :  { %485 = vrcp.f32 %v922_v28  ;;  %v379_v52 = vadd.f32 %v378_v5, %v371_v7  ;;  %v341_v56 = vmax.f32 %v700_v18, 1e-07  ;;  %v373_v50 = vsel %vm364_vm3, %v346_v60, 0.0 }
  0x78   :  { %v355_v8 = vadd.f32 %v354_v31, %v347_v21  ;;  %v349_v9 = vmin.f32 %v340_v47, 1.0  ;;  %vm366_vm5 = vcmp.eq.s32.totalorder %v907_v27, 6  ;;  %v374_v53 = vsel %vm365_vm4, %v347_v21, 0.0 }
  0x79   :  { %v484_v39 = vpop.eup %483  ;;  %v380_v54 = vadd.f32 %v379_v52, %v372_v30  ;;  %v389_v14 = vshrl.u32 %v388_v13, 7  ;;  %vm367_vm6 = vcmp.eq.s32.totalorder %v907_v27, 7  ;;  %v350_v26 = vmin.f32 %v341_v56, 1.0 }
  0x7a   :  { %v303_v63 = vsub.f32 1.0, %v484_v39  ;;  %v356_v62 = vadd.f32 %v355_v8, %v348_v45  ;;  %v375_v57 = vsel %vm366_vm5, %v348_v45, 0.0  ;;  %vm368_vm7 = vcmp.eq.s32.totalorder %v907_v27, 8 }
  0x7b   :  { %v381_v55 = vadd.f32 %v380_v54, %v373_v50  ;;  %v376_v35 = vsel %vm367_vm6, %v349_v9, 0.0  ;;  %v391_v58 = vand.u32 127, %v388_v13  ;;  %v393_v32 = vmul.u32 128, %v389_v14 }
  0x7c   :  { %v929_v33 = vmax.f32 %v303_v63, 0.0  ;;  %v357_v40 = vadd.f32 %v356_v62, %v349_v9  ;;  %v377_v38 = vsel %vm368_vm7, %v350_v26, 0.0  ;;  %vm323_vm8 = vweird.f32 %v922_v28 }
  0x7d   :  { %v486_v17 = vpop.eup %485  ;;  %v382_v18 = vadd.f32 %v381_v55, %v374_v53  ;;  %v396_v49 = vadd.s32 %v393_v32, %v391_v58  ;;  %v329_v43 = vand.u32 2147483648, %v922_v28  ;;  %v327_v4 = vand.u32 2147483647, %v922_v28 }
  0x7e   :  { %487 = vrsqrt.f32 %v929_v33  ;;  %v319_v25 = vmul.f32 %v486_v17, %v922_v28  ;;  %v358_v42 = vadd.f32 %v357_v40, %v350_v26  ;;  %vm324_vm9 = vweird.f32 %v486_v17 }
  0x7f   :  { %v383_v61 = vadd.f32 %v382_v18, %v375_v57  ;;  %vm397_vm10 = vcmp.lt.s32.totalorder %v396_v49, 64  ;;  %vm944_vm11 = vmor %vm323_vm8, %vm324_vm9  ;;  %vm312_vm12 = vcmp.eq.f32.partialorder %v929_v33, inf  ;;  %v315_v12 = vand.u32 2147483648, %v929_v33 }
  0x80   :  { %v320_v1 = vsub.f32 1.0, %v319_v25  ;;  %v330_v16 = vor.u32 1.1754944e-38, %v329_v43  ;;  %vm314_vm13 = vcmp.eq.f32.partialorder %v929_v33, 0.0  ;;  %vm328_vm14 = vcmp.eq.f32.partialorder %v327_v4, 8.507059e+37 }
  0x81   :  { %v384_v37 = vadd.f32 %v383_v61, %v376_v35 }
  0x82   :  { %v321_v23 = vmul.f32 %v486_v17, %v320_v1 }
  0x83   :  { %v385_v3 = vadd.f32 %v384_v37, %v377_v38 }
  0x84   :  { %v488_v0 = vpop.eup %487  ;;  %v322_v27 = vadd.f32 %v486_v17, %v321_v23 }
  0x85   :  { %v306_v2 = vmul.f32 %v488_v0, %v929_v33  ;;  %v386_v34 = vsub.f32 %v358_v42, %v385_v3 }
  0x86   :  { %v326_v22 = vsel %vm944_vm11, %v486_v17, %v322_v27 }
  0x87   :  { %v307_v59 = vmul.f32 %v488_v0, %v306_v2  ;;  %v387_v15 = vmul.f32 9.2103405, %v386_v34  ;;  %v331_v36 = vsel %vm328_vm14, %v330_v16, %v326_v22 }
  0x89   :  { %v308_v51 = vmul.f32 0.5, %v307_v59  ;;  %v399_v24 = vsel %vm397_vm10, %v387_v15, 0.0 }
  0x8a   :  { %401 = vst [vmem:[#allocation8] sm:$0xff] %v399_v24 }
  0x8b   :  { %v309_v10 = vsub.f32 1.5, %v308_v51  ;;  %423 = dma.vmem_to_hbm [thread:$0]  %s419_s1, 128, %s421_s26, [#allocation9]  }
  0x8d   :  { %v310_v44 = vmul.f32 %v488_v0, %v309_v10 }
  0x8f   :  { %v311_v6 = vmul.f32 %v310_v44, %v929_v33 }
  0x91   :  { %v313_v60 = vsel %vm312_vm12, %v929_v33, %v311_v6 }
  0x92   :  { %v316_v19 = vsel %vm314_vm13, %v315_v12, %v313_v60 }
  0x93   :  { %v317_v46 = vmul.f32 %v316_v19, %v913_v11 }
  0x95   :  { %v332_v48 = vmul.f32 %v331_v36, %v317_v46 }
  0x97   :  { %v398_v28 = vsel %vm397_vm10, %v332_v48, 0.0 }
  0x98   :  { %400 = vst [vmem:[#allocation7] sm:$0xff] %v398_v28 }
  0x99   :  { %412 = dma.vmem_to_hbm [thread:$0]  %s408_s27, 128, %s410_s30, [#allocation4]  }
  0x9a   :  { %589 = dma.done.wait [#allocation4], 128  }
  0x9b   :  { %590 = vsyncadd [#allocation4], 4294967168 }
  0x9c   :  { %591 = dma.done.wait [#allocation9], 128  }
  0x9d   :  { %592 = vsyncadd [#allocation9], 4294967168 }
  0x9e   :  { %432 = vsyncpa [#allocation3], 1 }
  0x9f   :  { %433 = vsyncpa [#allocation6], 1 }
  0xa0   :  { %434 = vsyncpa [#allocation4], 1 }
  0xa1   :  { %435 = vsyncpa [#allocation9], 1 }

</bundles_post_ra>
